<compile_context>
chip_gen: v7x
topology: tpu7x:2x2x1
jax: 0.10.0
libtpu: 0.0.40
codegen_flags: <defaults>
</compile_context>

<pallas_src>
import math

import jax
import jax.numpy as jnp
from jax.experimental import pallas as pl
from jax.experimental.pallas import tpu as pltpu

_INV_E = 1.0 / math.e
_MAX_TILE_BYTES = 4 * 1024 * 1024   # <= 4 MiB per tile
_MIN_GRID_STEPS = 8                 # >= ~4 steps per TensorCore on v7x


def _round_up(n, m):
    return ((n + m - 1) // m) * m


def _sublane(dtype):
    if dtype in (jnp.bfloat16, jnp.float16):
        return 16
    return 8  # float32


def _piecewise_linear_log_kernel(x_ref, o_ref):
    x = x_ref[...]
    e = jnp.asarray(math.e, dtype=x.dtype)
    inv_e = jnp.asarray(_INV_E, dtype=x.dtype)
    # torch.where(x > e, torch.log(x), x / e); divide replaced by constant multiply.
    # log(x) for x <= e (incl. x <= 0) is computed but discarded by where, matching
    # torch.where semantics.
    o_ref[...] = jnp.where(x > e, jnp.log(x), x * inv_e)


def _pick_layout(x):
    """Copy-free 2-D slab layout: (rows, lane) with lane a multiple of 128 if possible."""
    n = x.size
    for cand in (1024, 512, 256, 128):
        if n % cand == 0:
            return n // cand, cand
    # Fallback: natural trailing-dim layout.  Block last dim will equal the full
    # array dim, so the lane constraint is satisfied (stores are lane-masked).
    if x.ndim >= 2:
        lane = x.shape[-1]
        return n // lane, lane
    return 1, n


def _pick_block_rows(rows, lane, itemsize, sublane):
    if rows <= sublane:
        return rows  # block equals full row extent -> always legal
    max_rows_by_bytes = max(sublane, _MAX_TILE_BYTES // (lane * itemsize))
    rows_for_steps = _round_up(pl.cdiv(rows, _MIN_GRID_STEPS), sublane)
    block_rows = min(max_rows_by_bytes, rows_for_steps)
    block_rows = max(sublane, (block_rows // sublane) * sublane)
    return block_rows


def functional_module_forward(x):
    """Applies the wrapped functional (piecewise_linear_log) elementwise via Pallas."""
    orig_shape = x.shape
    dtype = x.dtype
    if x.size == 0:
        return x
    assert jnp.issubdtype(dtype, jnp.floating), "piecewise_linear_log expects floats"

    rows, lane = _pick_layout(x)
    slab = x.reshape(rows, lane)                      # contiguous reshape: no copy

    sublane = _sublane(dtype)
    block_rows = _pick_block_rows(rows, lane, jnp.dtype(dtype).itemsize, sublane)
    grid = (pl.cdiv(rows, block_rows),)               # edge block masked by Pallas

    out_slab = pl.pallas_call(
        _piecewise_linear_log_kernel,
        out_shape=jax.ShapeDtypeStruct((rows, lane), dtype),
        grid_spec=pltpu.PrefetchScalarGridSpec(
            num_scalar_prefetch=0,
            grid=grid,
            in_specs=[pl.BlockSpec((block_rows, lane), lambda r: (r, 0))],
            out_specs=pl.BlockSpec((block_rows, lane), lambda r: (r, 0)),
        ),
        compiler_params=pltpu.CompilerParams(
            dimension_semantics=("parallel",),
            vmem_limit_bytes=32 * 1024 * 1024,
        ),
    )(slab)

    return out_slab.reshape(orig_shape)               # contiguous reshape: no copy


def functional_module_ref(x):
    # Pure-JAX reference of the same functional, for correctness checks.
    e = jnp.asarray(math.e, dtype=x.dtype)
    return jnp.where(x > e, jnp.log(x), x / e)


if __name__ == "__main__":
    key = jax.random.PRNGKey(0)
    k1, k2, k3, k4 = jax.random.split(key, 4)

    # Values span both sides of e so both branches are exercised.
    cases = [
        # lane = 1024 path (n % 1024 == 0)
        jax.random.uniform(k1, (2, 16, 128), dtype=jnp.float32, minval=0.0, maxval=10.0),
        # canonical mel layout F=80: n = 2560 -> lane = 512 path, masked row edge
        jax.random.uniform(k2, (2, 16, 80), dtype=jnp.float32, minval=0.0, maxval=10.0),
        # no 128-multiple divides n -> natural (rows, 80) fallback, masked lanes + rows
        jax.random.uniform(k3, (3, 10, 80), dtype=jnp.float32, minval=0.0, maxval=10.0),
        # bf16 path (sublane = 16 handling)
        jax.random.uniform(k4, (4, 256), dtype=jnp.bfloat16, minval=0.0, maxval=10.0),
    ]

    for x in cases:
        out = jax.block_until_ready(functional_module_forward(x))
        ref = functional_module_ref(x)
        assert out.shape == x.shape and out.dtype == x.dtype
        tol = 1e-6 if x.dtype == jnp.float32 else 2e-2
        assert jnp.allclose(out.astype(jnp.float32), ref.astype(jnp.float32),
                            atol=tol, rtol=tol)

    print("KERNEL_OK")
</pallas_src>

<mosaic_0001>
module attributes {stable_mosaic.version = 11 : i64} {
  func.func @_piecewise_linear_log_kernel(%arg0: i32, %arg1: memref<4x1024xf32, #tpu.memory_space<vmem>>, %arg2: memref<4x1024xf32, #tpu.memory_space<vmem>>) attributes {dimension_semantics = [#tpu.dimension_semantics<parallel>], iteration_bounds = array<i64: 1>, scalar_prefetch = 0 : i64, scratch_operands = 0 : i64, tpu.core_type = #tpu.core_type<tc>, window_params = [{transform_indices = @transform_0, window_bounds = array<i64: 4, 1024>}, {transform_indices = @transform_1, window_bounds = array<i64: 4, 1024>}]} {
    %c0 = arith.constant 0 : index
    %c0_0 = arith.constant 0 : index
    %0 = vector.load %arg1[%c0, %c0_0] : memref<4x1024xf32, #tpu.memory_space<vmem>>, vector<4x1024xf32>
    %cst = arith.constant 2.71828175 : f32
    %1 = vector.broadcast %cst : f32 to vector<4x1024xf32>
    %2 = arith.cmpf ogt, %0, %1 : vector<4x1024xf32>
    %3 = math.log %0 : vector<4x1024xf32>
    %cst_1 = arith.constant 0.36787945 : f32
    %4 = vector.broadcast %cst_1 : f32 to vector<4x1024xf32>
    %5 = arith.mulf %0, %4 : vector<4x1024xf32>
    %6 = arith.select %2, %3, %5 : vector<4x1024xi1>, vector<4x1024xf32>
    %c0_2 = arith.constant 0 : index
    %c0_3 = arith.constant 0 : index
    %7 = vector.load %arg2[%c0_2, %c0_3] : memref<4x1024xf32, #tpu.memory_space<vmem>>, vector<4x1024xf32>
    tpu.vector_store %arg2[%c0_2, %c0_3], %6 {strides = array<i32>} : memref<4x1024xf32, #tpu.memory_space<vmem>>, vector<4x1024xf32>,
    return
  }
  func.func @transform_0(%arg0: i32) -> (i32, i32) {
    %c0_i32 = arith.constant 0 : i32
    %c0_i32_0 = arith.constant 0 : i32
    return %arg0, %c0_i32 : i32, i32
  }
  func.func @transform_1(%arg0: i32) -> (i32, i32) {
    %c0_i32 = arith.constant 0 : i32
    %c0_i32_0 = arith.constant 0 : i32
    return %arg0, %c0_i32 : i32, i32
  }
}

</mosaic_0001>

<bundles_post_ra>
// kernel: tpu_custom_call.1
= control target key start
LH: loop header
LB: loop body
LE: loop exit
PB: predicated region body
PF: predicated region fallthrough
CT: control target
= control target key end

     0   :  { %6 = vsyncpa [#allocation3], 0  ;;  %s158_s0 = inlined_call_operand.hbm [shape: f32[4,1024], index: 0, kind: input, shape index: {}]   ;;  %s159_s1 = inlined_call_operand.hbm [shape: f32[4,1024], index: 1, kind: output, shape index: {}]  }
   0x1   :  { %7 = vsyncpa [#allocation4], 0  ;;  %s122_s6 = smov [#allocation2]   ;;  %s74_s10 = scalar_lea.hbm %s158_s0, 512 }
   0x2   :  { %s14_s7 = sshll.u32 %s122_s6, 4  ;;  %p75_p0 = scmp.ne.s32.totalorder %s158_s0, %s74_s10  ;;  %s15_s7 = int_to_ptr.vmem [resolvable:$true] %s14_s7 }
   0x3   :  { %p78_p1 = scmp.lt.u32.totalorder %s74_s10, %s158_s0 }
   0x5   :  { %p80_p2 = pnand %p78_p1, %p75_p0 }
   0x7   :  { %83 = shalt.err (!%p80_p2)
}
   0x8   :  { %s84_s15 = scalar_lea.vmem %s15_s7, 512  ;;  %p89_p4 = scmp.lt.s32.totalorder %s15_s7, %s15_s7 }
   0x9   :  { %p85_p3 = scmp.ne.s32.totalorder %s15_s7, %s84_s15  ;;  %p90_p5 = scmp.lt.s32.totalorder %s84_s15, %s84_s15 }
   0xb   :  { %p91_p6 = por %p90_p5, %p89_p4 }
   0xd   :  { %p92_p7 = pnand %p91_p6, %p85_p3 }
   0xf   :  { %95 = shalt.err (!%p92_p7)
}
  0x10   :  { %17 = dma.hbm_to_vmem [thread:$0]  %s158_s0, 512, %s15_s7, [#allocation3]  }
  0x11   :  { %118 = dma.done.wait [#allocation3], 512  }
  0x12   :  { %119 = vsyncadd [#allocation3], 4294966784  ;;  %v21_v0 = vld [vmem:[#allocation2] sm:$0xff]  ;;  %v22_v1 = vld [vmem:[#allocation2 + $0x8] sm:$0xff]  ;;  %s123_s18 = smov [#allocation5]  }
  0x13   :  { %v23_v2 = vld [vmem:[#allocation2 + $0x10] sm:$0xff]  ;;  %66 = vlog2.f32 %v21_v0  ;;  %v24_v3 = vld [vmem:[#allocation2 + $0x18] sm:$0xff]  ;;  %v37_v4 = vmul.f32 0.36787945, %v21_v0  ;;  %vm25_vm0 = vcmp.gt.f32.partialorder %v21_v0, 2.7182817 }
  0x14   :  { %68 = vlog2.f32 %v22_v1  ;;  %v38_v6 = vmul.f32 0.36787945, %v22_v1  ;;  %s55_s19 = sshll.u32 %s123_s18, 4  ;;  %vm26_vm1 = vcmp.gt.f32.partialorder %v22_v1, 2.7182817  ;;  %s56_s19 = int_to_ptr.vmem [resolvable:$true] %s55_s19 }
  0x15   :  { %70 = vlog2.f32 %v23_v2  ;;  %v39_v9 = vmul.f32 0.36787945, %v23_v2  ;;  %vm27_vm2 = vcmp.gt.f32.partialorder %v23_v2, 2.7182817  ;;  %v40_v12 = vmul.f32 0.36787945, %v24_v3  ;;  %p101_p9 = scmp.lt.s32.totalorder %s56_s19, %s56_s19 }
  0x16   :  { %72 = vlog2.f32 %v24_v3  ;;  %vm28_vm3 = vcmp.gt.f32.partialorder %v24_v3, 2.7182817  ;;  %s96_s0 = scalar_lea.vmem %s56_s19, 512 }
  0x17   :  { %p97_p8 = scmp.ne.s32.totalorder %s56_s19, %s96_s0  ;;  %p102_p10 = scmp.lt.s32.totalorder %s96_s0, %s96_s0 }
  0x19   :  { %p103_p11 = por %p102_p10, %p101_p9 }
  0x1b   :  { %p104_p12 = pnand %p103_p11, %p97_p8 }
  0x1d   :  { %v67_v5 = vpop.eup %66 }
  0x1e   :  { %v69_v7 = vpop.eup %68  ;;  %v30_v8 = vmul.f32 0.6931472, %v67_v5 }
  0x1f   :  { %v71_v10 = vpop.eup %70  ;;  %v32_v11 = vmul.f32 0.6931472, %v69_v7 }
  0x20   :  { %v73_v13 = vpop.eup %72  ;;  %v41_v14 = vsel %vm25_vm0, %v30_v8, %v37_v4  ;;  %v34_v15 = vmul.f32 0.6931472, %v71_v10 }
  0x21   :  { %45 = vst [vmem:[#allocation5] sm:$0xff] %v41_v14  ;;  %v42_v16 = vsel %vm26_vm1, %v32_v11, %v38_v6  ;;  %v36_v17 = vmul.f32 0.6931472, %v73_v13 }
  0x22   :  { %46 = vst [vmem:[#allocation5 + $0x8] sm:$0xff] %v42_v16  ;;  %v43_v18 = vsel %vm27_vm2, %v34_v15, %v39_v9 }
  0x23   :  { %47 = vst [vmem:[#allocation5 + $0x10] sm:$0xff] %v43_v18  ;;  %v44_v19 = vsel %vm28_vm3, %v36_v17, %v40_v12 }
  0x24   :  { %48 = vst [vmem:[#allocation5 + $0x18] sm:$0xff] %v44_v19 }
  0x25   :  { %107 = shalt.err (!%p104_p12)
}
  0x26   :  { %s108_s22 = scalar_lea.hbm %s159_s1, 512 }
  0x27   :  { %p109_p13 = scmp.ne.s32.totalorder %s159_s1, %s108_s22  ;;  %p112_p0 = scmp.lt.u32.totalorder %s108_s22, %s159_s1 }
  0x29   :  { %p114_p1 = pnand %p112_p0, %p109_p13 }
  0x2b   :  { %117 = shalt.err (!%p114_p1)
}
  0x2c   :  { %58 = dma.vmem_to_hbm [thread:$0]  %s56_s19, 512, %s159_s1, [#allocation4]  }
  0x2d   :  { %120 = dma.done.wait [#allocation4], 512  }
  0x2e   :  { %121 = vsyncadd [#allocation4], 4294966784 }
  0x2f   :  { %62 = vsyncpa [#allocation3], 1 }
  0x30   :  { %63 = vsyncpa [#allocation4], 1 }

</bundles_post_ra>
